<compile_context>
chip_gen: v7x
topology: tpu7x:2x2x1
jax: 0.10.0
libtpu: 0.0.40
codegen_flags: <defaults>
</compile_context>

<pallas_src>
import jax
import jax.numpy as jnp
from jax.experimental import pallas as pl
from jax.experimental.pallas import tpu as pltpu


def _round_down_mult(x, m):
    return (x // m) * m


def _round_up_mult(x, m):
    return ((x + m - 1) // m) * m


def csa_kernel(pos_ref, feat_ref, wqc_ref, wk_ref, wv_ref, out_ref):
    # pos_ref / feat_ref / out_ref : (C, Tn)  (batch dim squeezed by BlockSpec;
    #                                          channels on sublanes, N on lanes)
    # wqc_ref : (C, 1) column-sums of Wq ;  wk_ref / wv_ref : (C, C)
    pos = pos_ref[...]    # (C, Tn)
    feat = feat_ref[...]  # (C, Tn)

    # k = Wk @ pos, v = Wv @ feat  -> MXU, weights on LHS, no transpose needed.
    k = jnp.dot(wk_ref[...], pos, preferred_element_type=jnp.float32)   # (C, Tn)
    v = jnp.dot(wv_ref[...], feat, preferred_element_type=jnp.float32)  # (C, Tn)

    # sum over output channels of q = (colsum Wq) . pos  -> VPU mul + sublane reduce.
    sq = jnp.sum(wqc_ref[...] * pos, axis=0, keepdims=True)             # (1, Tn)

    # energy[c, n] = sq[n] * k[c, n], normalized by its channel-sum (+1e-9).
    energy = sq * k                                                     # (C, Tn)
    denom = 1e-9 + jnp.sum(energy, axis=0, keepdims=True)               # (1, Tn)
    e = energy * pl.reciprocal(denom, approx=False)                     # (C, Tn)

    # softmax over the channel axis (PyTorch softmax(dim=1) of (B, C, N)).
    m = jnp.max(e, axis=0, keepdims=True)
    p = jnp.exp(e - m)
    attn = p * pl.reciprocal(jnp.sum(p, axis=0, keepdims=True), approx=False)

    # residual: attention * v + feature
    out_ref[...] = (attn * v + feat).astype(out_ref.dtype)


def csa_layer(feature, position, wq, wk, wv):
    """feature, position: (B, C, N).  wq/wk/wv: (C, C) Conv1d weights.  Returns (B, C, N)."""
    B, C, N = feature.shape
    f32 = 4  # kernel computes in float32

    # ---- VMEM-aware tile sizing -------------------------------------------
    try:
        vmem_cap = int(pltpu.get_tpu_info().vmem_capacity_bytes)
    except Exception:  # conservative fallback (v7x per-TC VMEM)
        vmem_cap = 64 * 1024 * 1024
    budget = vmem_cap // 2  # leave headroom for compiler-internal scratch

    # Per lane of tile: 2 buffers x 3 activation blocks (pos/feat/out) plus
    # ~5 full-size f32 temporaries the body materializes (k, v, energy, e, p/attn).
    per_lane = (2 * 3 + 5) * C * f32
    weights_bytes = 2 * C * C * f32 + C * f32          # Wk, Wv, colsum(Wq)
    avail = max(budget - 2 * weights_bytes, 128 * per_lane)
    tile_n = min(avail // per_lane, 16384)              # >16K lanes: diminishing returns
    tile_n = max(128, _round_down_mult(tile_n, 128))    # lane-dense tiles when tiling

    if N <= tile_n:
        tile_n = N                                       # full-N block (always legal)

    # v7x has 2 TensorCores: guarantee >= 2 steps on the "parallel" grid axes.
    if B * ((N + tile_n - 1) // tile_n) < 2 and N >= 256:
        tile_n = min(tile_n, _round_up_mult((N + 1) // 2, 128))

    n_tiles = (N + tile_n - 1) // tile_n
    grid = (B, n_tiles)

    # Scoped-VMEM limit derived from the actual footprint, never full physical VMEM.
    footprint = (2 * 3 + 5) * C * tile_n * f32 + 2 * weights_bytes
    vmem_limit = int(min(vmem_cap * 3 // 4, max(32 << 20, footprint + (8 << 20))))

    # Precompute the Wq column-sum once in the wrapper (q matmul eliminated).
    wq_colsum = jnp.sum(wq, axis=0).reshape(C, 1).astype(jnp.float32)

    # Batch dim squeezed (None) -> kernel refs are 2-D (C, tile_n).
    act_spec = pl.BlockSpec((None, C, tile_n), lambda b, n: (b, 0, n))

    itemsize = jnp.dtype(feature.dtype).itemsize
    cost = pl.CostEstimate(
        flops=4 * B * C * C * N + 10 * B * C * N,
        transcendentals=B * C * N,
        bytes_accessed=3 * B * C * N * itemsize + 2 * C * C * 4 + C * 4,
    )

    return pl.pallas_call(
        csa_kernel,
        out_shape=jax.ShapeDtypeStruct((B, C, N), feature.dtype),
        grid_spec=pltpu.PrefetchScalarGridSpec(
            num_scalar_prefetch=0,
            grid=grid,
            in_specs=[
                act_spec,                                      # position tile
                act_spec,                                      # feature tile
                pl.BlockSpec((C, 1), lambda b, n: (0, 0)),     # colsum(Wq) (grid-invariant)
                pl.BlockSpec((C, C), lambda b, n: (0, 0)),     # Wk (grid-invariant)
                pl.BlockSpec((C, C), lambda b, n: (0, 0)),     # Wv (grid-invariant)
            ],
            out_specs=act_spec,
        ),
        compiler_params=pltpu.CompilerParams(
            dimension_semantics=("parallel", "parallel"),
            vmem_limit_bytes=vmem_limit,
        ),
        cost_estimate=cost,
    )(position, feature, wq_colsum, wk, wv)


def csa_layer_ref(feature, position, wq, wk, wv):
    """Pure-JAX reference mirroring the PyTorch forward, for verification."""
    q = jnp.einsum("oc,bcn->bon", wq, position)          # (B, C, N)
    k = jnp.einsum("oc,bcn->bon", wk, position)
    v = jnp.einsum("oc,bcn->bon", wv, feature)
    x_q = jnp.transpose(q, (0, 2, 1))[:, :, :, None]     # (B, N, C, 1)
    x_k = jnp.transpose(k, (0, 2, 1))[:, :, None, :]     # (B, N, 1, C)
    energy = jnp.matmul(x_q, x_k)                        # (B, N, C, C)
    energy = jnp.sum(energy, axis=-2)                    # (B, N, C)
    energy = energy / (1e-9 + jnp.sum(energy, axis=-1, keepdims=True))
    att = jax.nn.softmax(jnp.transpose(energy, (0, 2, 1)), axis=1)  # (B, C, N)
    return att * v + feature


if __name__ == "__main__":
    B, C, N = 2, 8, 16
    key = jax.random.PRNGKey(0)
    k1, k2, k3, k4, k5 = jax.random.split(key, 5)

    feature = jax.random.normal(k1, (B, C, N), dtype=jnp.float32)
    position = jax.random.normal(k2, (B, C, N), dtype=jnp.float32)
    # Conv1d(C, C, 1, bias=False) weights: (C_out, C_in) after squeezing the kernel dim
    wq = 0.1 * jax.random.normal(k3, (C, C), dtype=jnp.float32)
    wk = 0.1 * jax.random.normal(k4, (C, C), dtype=jnp.float32)
    wv = 0.1 * jax.random.normal(k5, (C, C), dtype=jnp.float32)

    out = csa_layer(feature, position, wq, wk, wv)
    out = jax.block_until_ready(out)

    ref = csa_layer_ref(feature, position, wq, wk, wv)
    assert out.shape == (B, C, N)
    assert jnp.allclose(out, ref, atol=1e-5, rtol=1e-5), "mismatch vs reference"

    # TODO(synk): after_norm (BatchNorm1d) and act are unused in the module's forward, so not implemented.
    print("KERNEL_OK")
</pallas_src>

<mosaic_0001>
module attributes {stable_mosaic.version = 11 : i64} {
  func.func @csa_kernel(%arg0: i32, %arg1: i32, %arg2: memref<1x8x16xf32, #tpu.memory_space<vmem>>, %arg3: memref<1x8x16xf32, #tpu.memory_space<vmem>>, %arg4: memref<8x1xf32, #tpu.memory_space<vmem>>, %arg5: memref<8x8xf32, #tpu.memory_space<vmem>>, %arg6: memref<8x8xf32, #tpu.memory_space<vmem>>, %arg7: memref<1x8x16xf32, #tpu.memory_space<vmem>>) attributes {dimension_semantics = [#tpu.dimension_semantics<parallel>, #tpu.dimension_semantics<parallel>], iteration_bounds = array<i64: 2, 1>, scalar_prefetch = 0 : i64, scratch_operands = 0 : i64, tpu.core_type = #tpu.core_type<tc>, window_params = [{transform_indices = @transform_0, window_bounds = array<i64: 1, 8, 16>}, {transform_indices = @transform_1, window_bounds = array<i64: 1, 8, 16>}, {pipeline_mode = #tpu.pipeline_mode<synchronous>, transform_indices = @transform_2, window_bounds = array<i64: 8, 1>}, {pipeline_mode = #tpu.pipeline_mode<synchronous>, transform_indices = @transform_3, window_bounds = array<i64: 8, 8>}, {pipeline_mode = #tpu.pipeline_mode<synchronous>, transform_indices = @transform_4, window_bounds = array<i64: 8, 8>}, {transform_indices = @transform_5, window_bounds = array<i64: 1, 8, 16>}]} {
    %c0 = arith.constant 0 : index
    %c0_0 = arith.constant 0 : index
    %c0_1 = arith.constant 0 : index
    %0 = vector.load %arg2[%c0, %c0_0, %c0_1] : memref<1x8x16xf32, #tpu.memory_space<vmem>>, vector<1x8x16xf32>
    %1 = vector.shape_cast %0 : vector<1x8x16xf32> to vector<8x16xf32>
    %c0_2 = arith.constant 0 : index
    %c0_3 = arith.constant 0 : index
    %c0_4 = arith.constant 0 : index
    %2 = vector.load %arg3[%c0_2, %c0_3, %c0_4] : memref<1x8x16xf32, #tpu.memory_space<vmem>>, vector<1x8x16xf32>
    %3 = vector.shape_cast %2 : vector<1x8x16xf32> to vector<8x16xf32>
    %c0_5 = arith.constant 0 : index
    %c0_6 = arith.constant 0 : index
    %4 = vector.load %arg5[%c0_5, %c0_6] : memref<8x8xf32, #tpu.memory_space<vmem>>, vector<8x8xf32>
    %cst = arith.constant dense<0.000000e+00> : vector<8x16xf32>
    %5 = tpu.matmul %4, %1, %cst {dimension_numbers = #tpu.dot_dimension_numbers<[1], [0], [0], [1], [0, 0, 1, 1], [], []>} : vector<8x8xf32>, vector<8x16xf32>, vector<8x16xf32> -> vector<8x16xf32>
    %c0_7 = arith.constant 0 : index
    %c0_8 = arith.constant 0 : index
    %6 = vector.load %arg6[%c0_7, %c0_8] : memref<8x8xf32, #tpu.memory_space<vmem>>, vector<8x8xf32>
    %cst_9 = arith.constant dense<0.000000e+00> : vector<8x16xf32>
    %7 = tpu.matmul %6, %3, %cst_9 {dimension_numbers = #tpu.dot_dimension_numbers<[1], [0], [0], [1], [0, 0, 1, 1], [], []>} : vector<8x8xf32>, vector<8x16xf32>, vector<8x16xf32> -> vector<8x16xf32>
    %c0_10 = arith.constant 0 : index
    %c0_11 = arith.constant 0 : index
    %8 = vector.load %arg4[%c0_10, %c0_11] : memref<8x1xf32, #tpu.memory_space<vmem>>, vector<8x1xf32>
    %9 = vector.broadcast %8 : vector<8x1xf32> to vector<8x16xf32>
    %10 = arith.mulf %9, %1 : vector<8x16xf32>
    %cst_12 = arith.constant dense<0.000000e+00> : vector<16xf32>
    %11 = vector.multi_reduction <add>, %10, %cst_12 [0] : vector<8x16xf32> to vector<16xf32>
    %12 = vector.shape_cast %11 : vector<16xf32> to vector<1x16xf32>
    %13 = vector.broadcast %12 : vector<1x16xf32> to vector<8x16xf32>
    %14 = arith.mulf %13, %5 : vector<8x16xf32>
    %cst_13 = arith.constant dense<0.000000e+00> : vector<16xf32>
    %15 = vector.multi_reduction <add>, %14, %cst_13 [0] : vector<8x16xf32> to vector<16xf32>
    %16 = vector.shape_cast %15 : vector<16xf32> to vector<1x16xf32>
    %cst_14 = arith.constant 9.99999971E-10 : f32
    %17 = vector.broadcast %cst_14 : f32 to vector<1x16xf32>
    %18 = arith.addf %17, %16 : vector<1x16xf32>
    %19 = tpu.reciprocal %18 : vector<1x16xf32> -> vector<1x16xf32>
    %20 = vector.broadcast %19 : vector<1x16xf32> to vector<8x16xf32>
    %21 = arith.mulf %14, %20 : vector<8x16xf32>
    %cst_15 = arith.constant dense<0xFF800000> : vector<16xf32>
    %22 = vector.multi_reduction <maximumf>, %21, %cst_15 [0] : vector<8x16xf32> to vector<16xf32>
    %23 = vector.shape_cast %22 : vector<16xf32> to vector<1x16xf32>
    %24 = vector.broadcast %23 : vector<1x16xf32> to vector<8x16xf32>
    %25 = arith.subf %21, %24 : vector<8x16xf32>
    %26 = math.exp %25 : vector<8x16xf32>
    %cst_16 = arith.constant dense<0.000000e+00> : vector<16xf32>
    %27 = vector.multi_reduction <add>, %26, %cst_16 [0] : vector<8x16xf32> to vector<16xf32>
    %28 = vector.shape_cast %27 : vector<16xf32> to vector<1x16xf32>
    %29 = tpu.reciprocal %28 : vector<1x16xf32> -> vector<1x16xf32>
    %30 = vector.broadcast %29 : vector<1x16xf32> to vector<8x16xf32>
    %31 = arith.mulf %26, %30 : vector<8x16xf32>
    %32 = arith.mulf %31, %7 : vector<8x16xf32>
    %33 = arith.addf %32, %3 : vector<8x16xf32>
    %c0_17 = arith.constant 0 : index
    %c0_18 = arith.constant 0 : index
    %c0_19 = arith.constant 0 : index
    %34 = vector.load %arg7[%c0_17, %c0_18, %c0_19] : memref<1x8x16xf32, #tpu.memory_space<vmem>>, vector<1x8x16xf32>
    %35 = vector.shape_cast %34 : vector<1x8x16xf32> to vector<8x16xf32>
    %36 = vector.shape_cast %33 : vector<8x16xf32> to vector<1x8x16xf32>
    tpu.vector_store %arg7[%c0_17, %c0_18, %c0_19], %36 {strides = array<i32>} : memref<1x8x16xf32, #tpu.memory_space<vmem>>, vector<1x8x16xf32>,
    return
  }
  func.func @transform_0(%arg0: i32, %arg1: i32) -> (i32, i32, i32) {
    %c0_i32 = arith.constant 0 : i32
    %c0_i32_0 = arith.constant 0 : i32
    return %arg0, %c0_i32, %arg1 : i32, i32, i32
  }
  func.func @transform_1(%arg0: i32, %arg1: i32) -> (i32, i32, i32) {
    %c0_i32 = arith.constant 0 : i32
    %c0_i32_0 = arith.constant 0 : i32
    return %arg0, %c0_i32, %arg1 : i32, i32, i32
  }
  func.func @transform_2(%arg0: i32, %arg1: i32) -> (i32, i32) {
    %c0_i32 = arith.constant 0 : i32
    %c0_i32_0 = arith.constant 0 : i32
    %c0_i32_1 = arith.constant 0 : i32
    return %c0_i32, %c0_i32_0 : i32, i32
  }
  func.func @transform_3(%arg0: i32, %arg1: i32) -> (i32, i32) {
    %c0_i32 = arith.constant 0 : i32
    %c0_i32_0 = arith.constant 0 : i32
    %c0_i32_1 = arith.constant 0 : i32
    return %c0_i32, %c0_i32_0 : i32, i32
  }
  func.func @transform_4(%arg0: i32, %arg1: i32) -> (i32, i32) {
    %c0_i32 = arith.constant 0 : i32
    %c0_i32_0 = arith.constant 0 : i32
    %c0_i32_1 = arith.constant 0 : i32
    return %c0_i32, %c0_i32_0 : i32, i32
  }
  func.func @transform_5(%arg0: i32, %arg1: i32) -> (i32, i32, i32) {
    %c0_i32 = arith.constant 0 : i32
    %c0_i32_0 = arith.constant 0 : i32
    return %arg0, %c0_i32, %arg1 : i32, i32, i32
  }
}

</mosaic_0001>

<bundles_post_ra>
// kernel: tpu_custom_call.1
= control target key start
LH: loop header
LB: loop body
LE: loop exit
PB: predicated region body
PF: predicated region fallthrough
CT: control target
= control target key end

     0   :  { %10 = vsyncpa [#allocation3], 0  ;;  %s1147_s0 = inlined_call_operand.hbm [shape: f32[2,8,16], index: 0, kind: input, shape index: {}]   ;;  %s1148_s1 = inlined_call_operand.hbm [shape: f32[2,8,16], index: 1, kind: input, shape index: {}]   ;;  %s1149_s2 = inlined_call_operand.vmem [shape: f32[8,1], index: 2, kind: input, shape index: {}]   ;;  %s1150_s3 = inlined_call_operand.vmem [shape: f32[8,8], index: 3, kind: input, shape index: {}]   ;;  %s1151_s4 = inlined_call_operand.vmem [shape: f32[8,8], index: 4, kind: input, shape index: {}]   ;;  %s1152_s5 = inlined_call_operand.hbm [shape: f32[2,8,16], index: 5, kind: output, shape index: {}]  }
   0x1   :  { %12 = vsyncpa [#allocation3 + $0x1], 0 }
   0x2   :  { %13 = vsyncpa [#allocation6], 0 }
   0x3   :  { %15 = vsyncpa [#allocation6 + $0x1], 0 }
   0x4   :  { %16 = vsyncpa [#allocation4], 0 }
   0x5   :  { %18 = vsyncpa [#allocation4 + $0x1], 0  ;;  %s908_s18 = smov 0   ;;  %s910_s19 = smov 0  }
   0x6   :  { %s912_s20 = smov 0   ;;  %s914_s21 = smov 0  }
   0x7   :  { %s916_s22 = smov 0   ;;  %s918_s23 = smov 0  }
   0x8 LB: > { %s615_s24 = sadd.s32 4294967295, %s870_s23   ;;  %s616_s25 = sadd.s32 4294967294, %s870_s23   ;;  %s870_s23 = sphi %s918_s23, %s24_s23   ;;  %s866_s22 = sphi %s916_s22, %s1172_s22   ;;  %s862_s21 = sphi %s914_s21, %s1171_s21   ;;  %s858_s20 = sphi %s912_s20, %s1170_s20   ;;  %s854_s19 = sphi %s910_s19, %s1169_s19   ;;  %s850_s18 = sphi %s908_s18, %s1168_s18  }
   0x9   : > { %s36_s26 = sadd.s32 1, %s866_s22  ;;  %s45_s27 = sadd.s32 1, %s858_s20 }
   0xa   : > { %p38_p0 = scmp.ge.s32.totalorder %s36_s26, 2  ;;  %p52_p1 = scmp.ne.s32.totalorder %s858_s20, %s854_s19 }
   0xb   : > { %p53_p2 = scmp.eq.s32.totalorder %s870_s23, 0  ;;  %p58_p3 = scmp.ne.s32.totalorder %s854_s19, %s850_s18 }
   0xc   : > { %s1174_s26 = smov (%p38_p0, %s36_s26), 0  ;;  %p59_p5 = scmp.eq.s32.totalorder %s615_s24, 0 }
   0xd   : > { %p949_p4 = por %p53_p2, %p52_p1  ;;  %s40_s29 = ssub.s32 %s866_s22, %s1174_s26 }
   0xe   : > { %p175_p6 = scmp.eq.s32.totalorder %s615_s24, 1  ;;  %p43_p7 = scmp.eq.s32.totalorder %s40_s29, 0 }
   0xf   : > { %p955_p8 = por %p59_p5, %p58_p3  ;;  %p181_p10 = scmp.eq.s32.totalorder %s616_s25, 1 }
  0x10   : > { %p959_p9 = por %p175_p6, %p52_p1  ;;  %p664_p13 = scmp.lt.s32.totalorder %s870_s23, 2 }
  0x11   : > { %s1156_s30 = scalar_select %p955_p8, 1, 0 }
  0x12   : > { %s1157_s6 = scalar_select %p959_p9, 1, 0 }
  0x13   : > { %s964_s7 = scalar_select %p43_p7, %s858_s20, %s45_s27  }
  0x14   : > { %p966_p11 = por %p181_p10, %p58_p3  ;;  %s973_s9 = sand.u32 1, %s858_s20  }
  0x15   : > { %s619_s10 = sshll.u32 %s973_s9, 3  ;;  %s620_s11 = sshll.u32 %s866_s22, 7 }
  0x16   : > { %s1158_s8 = scalar_select %p966_p11, 1, 0 }
  0x17   : > { %s982_s14 = scalar_lea.hbm %s1147_s0, %s620_s11  ;;  %s214_s15 = scalar_lea.vmem [#allocation2], %s619_s10 }
  0x18   : > { %s222_s16 = sshll.u32 %s214_s15, 4  ;;  %p990_p0 = pnand %p664_p13, %p949_p4  ;;  %s986_s16 = int_to_ptr.vmem [resolvable:$true] %s222_s16 }
  0x19   : > { %s211_s24 = scalar_lea.sflag [#allocation3], %s973_s9  ;;  %s724_s25 = scalar_lea.hbm %s982_s14, 128 }
  0x1a   : > { %p725_p3 = scmp.ne.s32.totalorder %s982_s14, %s724_s25  ;;  %p726_p5 = pneg %p990_p0 }
  0x1b   : > { %s729_s28 = scalar_lea.hbm %s1147_s0, 256  ;;  %p730_p4 = scmp.lt.u32.totalorder %s982_s14, %s1147_s0 }
  0x1c   : > { %p727_p6 = pnand %p726_p5, %p725_p3  ;;  %p731_p10 = scmp.lt.u32.totalorder %s729_s28, %s724_s25 }
  0x1d   : > { %p733_p12 = scmp.lt.u32.totalorder %s724_s25, %s982_s14 }
  0x1e   : > { %p728_p7 = pneg %p727_p6  ;;  %p732_p13 = por %p731_p10, %p730_p4 }
  0x20   : > { %p734_p1 = por %p733_p12, %p732_p13 }
  0x22   : > { %p735_p2 = pnand %p734_p1, %p728_p7 }
  0x24   : > { %738 = shalt.err (!%p735_p2)
}
  0x25   : > { %s739_s15 = scalar_lea.vmem %s986_s16, 128  ;;  %s872_s27 = smov [#allocation2]  }
  0x26   : > { %p740_p3 = scmp.ne.s32.totalorder %s986_s16, %s739_s15  ;;  %s744_s29 = sshll.u32 %s872_s27, 4  ;;  %s745_s29 = int_to_ptr.vmem [resolvable:$false] %s744_s29 }
  0x27   : > { %s746_s12 = scalar_lea.vmem %s745_s29, 256  ;;  %p747_p9 = scmp.lt.s32.totalorder %s986_s16, %s745_s29 }
  0x28   : > { %p742_p6 = pnand %p740_p3, %p726_p5  ;;  %p748_p4 = scmp.lt.s32.totalorder %s746_s12, %s739_s15 }
  0x2a   : > { %p743_p11 = pneg %p742_p6  ;;  %p749_p10 = por %p748_p4, %p747_p9 }
  0x2c   : > { %p750_p12 = pnand %p749_p10, %p743_p11 }
  0x2e   : > { %753 = shalt.err (!%p750_p12)
}
  0x2f   : > { %656 = dma.hbm_to_vmem [thread:$0]  (!%p990_p0), %s982_s14, 128, %s986_s16, %s211_s24  }
  0x30   : > { %p1160_p1 = scmp.lt.s32.totalorder %s870_s23, 3  ;;  %p1161_p2 = scmp.ge.s32.totalorder %s870_s23, 1 }
  0x31   : > { %s1035_s15 = scalar_lea.hbm %s1148_s1, %s620_s11  ;;  %s233_s27 = scalar_lea.vmem [#allocation5], %s619_s10 }
  0x32   : > { %p1026_p7 = pnand %p1161_p2, %p1160_p1  ;;  %s241_s29 = sshll.u32 %s233_s27, 4  ;;  %s242_s29 = int_to_ptr.vmem [resolvable:$true] %s241_s29 }
  0x33   : > { %s230_s14 = scalar_lea.sflag [#allocation6], %s973_s9  ;;  %s754_s16 = scalar_lea.hbm %s1035_s15, 128 }
  0x34   : > { %s1162_s25 = scalar_select %p1026_p7, 1, 0 }
  0x35   : > { %p755_p9 = scmp.ne.s32.totalorder %s1035_s15, %s754_s16  ;;  %s759_s11 = scalar_lea.hbm %s1148_s1, 256 }
  0x36   : > { %p760_p3 = scmp.lt.u32.totalorder %s1035_s15, %s1148_s1  ;;  %p761_p6 = scmp.lt.u32.totalorder %s759_s11, %s754_s16 }
  0x37   : > { %p757_p11 = pnand %p755_p9, %p726_p5  ;;  %p763_p10 = scmp.lt.u32.totalorder %s754_s16, %s1035_s15 }
  0x38   : > { %p762_p4 = por %p761_p6, %p760_p3 }
  0x39   : > { %p758_p13 = pneg %p757_p11 }
  0x3a   : > { %p764_p12 = por %p763_p10, %p762_p4 }
  0x3c   : > { %p765_p1 = pnand %p764_p12, %p758_p13 }
  0x3e   : > { %768 = shalt.err (!%p765_p1)
}
  0x3f   : > { %s769_s9 = scalar_lea.vmem %s242_s29, 128  ;;  %s873_s10 = smov [#allocation5]  }
  0x40   : > { %p770_p2 = scmp.ne.s32.totalorder %s242_s29, %s769_s9  ;;  %s774_s27 = sshll.u32 %s873_s10, 4  ;;  %s775_s27 = int_to_ptr.vmem [resolvable:$false] %s774_s27 }
  0x41   : > { %s776_s24 = scalar_lea.vmem %s775_s27, 256  ;;  %p777_p8 = scmp.lt.s32.totalorder %s242_s29, %s775_s27 }
  0x42   : > { %p772_p9 = pnand %p770_p2, %p726_p5  ;;  %p778_p7 = scmp.lt.s32.totalorder %s776_s24, %s769_s9 }
  0x44   : > { %p773_p11 = pneg %p772_p9  ;;  %p779_p3 = por %p778_p7, %p777_p8 }
  0x46   : > { %p780_p6 = pnand %p779_p3, %p773_p11 }
  0x48   : > { %783 = shalt.err (!%p780_p6)
}
  0x49   : > { %659 = dma.hbm_to_vmem [thread:$0]  (!%p990_p0), %s1035_s15, 128, %s242_s29, %s230_s14  }
  0x4a   : > { %p1163_p13 = scmp.ne.s32.totalorder %s1162_s25, 0 }
  0x4b   : > { %s1062_s16 = sand.u32 (!%p1163_p13), 1, %s854_s19   ;;  %p1164_p8 = scmp.ne.s32.totalorder (!%p1163_p13), %s1156_s30, 0 }
  0x4c   : > { %250 = sbr.rel (%p1163_p13) target bundleno = 404 (0x194), region = 40  ;;  %s1065_s12 = sshll.u32 (!%p1163_p13), %s1062_s16, 3 }
  0x4d   : > { %s253_s11 = scalar_lea.sflag (!%p1163_p13), [#allocation3], %s1062_s16  ;;  %s256_s28 = scalar_lea.vmem (!%p1163_p13), [#allocation2], %s1065_s12 }
  0x53   : > { %837 = dma.done.wait (%p1164_p8), %s253_s11, 128  }
  0x54   : > { %839 = vsyncadd (%p1164_p8), %s253_s11, 4294967168  ;;  %s262_s17 = scalar_lea.sflag [#allocation6], %s1062_s16  ;;  %s265_s25 = scalar_lea.vmem [#allocation5], %s1065_s12 }
  0x55   : > { %841 = dma.done.wait (%p1164_p8), %s262_s17, 128  }
  0x56   : > { %843 = vsyncadd (%p1164_p8), %s262_s17, 4294967168  ;;  %v874_v0 = vmov 0.0   ;;  %vm875_vm0 = vmmov 0   ;;  %v876_v1 = vmov 0   ;;  %vm300_vm1 = vcmask 64512   ;;  %v297_v2 = vld [vmem:[%s256_s28] sm:$0xff] }
  0x57   : > { %637 = vmatprep.subr.mxu0 %v874_v0  ;;  %639 = vmatprep.mubr.msk.f32.mxu0 %vm875_vm0, %v874_v0  ;;  %v299_v3 = vld [vmem:[%s1150_s3] sm:$0xff]  ;;  %v298_v5 = vld [vmem:[%s265_s25] sm:$0xff]  ;;  %vm455_vm2 = vcmask 130048   ;;  %s630_s10 = sshll.u32 %s862_s21, 7  ;;  %s296_s27 = scalar_lea.vmem [#allocation7], %s1065_s12 }
  0x58   : > { %717 = vset.pattern.permute.xlu0 %v876_v1  ;;  %642 = vmatprep.subr.mxu1 %v874_v0  ;;  %v448_v4 = vld [vmem:[%s1149_s2] sm:$0xff]  ;;  %s511_s24 = sshll.u32 %s296_s27, 4  ;;  %s1097_s17 = scalar_lea.hbm %s1152_s5, %s630_s10  ;;  %s1099_s24 = int_to_ptr.vmem [resolvable:$true] %s511_s24 }
  0x59   : > { %644 = vmatprep.mubr.msk.f32.mxu1 %vm875_vm0, %v874_v0  ;;  %638 = vmatpush3.msra.mxu0 %v297_v2  ;;  %v374_v6 = vld [vmem:[%s1151_s4] sm:$0xff]  ;;  %s497_s25 = scalar_lea.sflag [#allocation4], %s1062_s16  ;;  %s784_s15 = scalar_lea.vmem %s1099_s24, 128 }
  0x5a   : > { %451 = vperm.xlu0 %717, %v448_v4   ;;  %640 = vmatmul.mubr.msk.f32.vlgmr.msra.gmra.mrb[0].mxu0 %vm300_vm1, %v299_v3  ;;  %p785_p0 = scmp.ne.s32.totalorder %s1099_s24, %s784_s15  ;;  %p1165_p5 = scmp.ne.s32.totalorder %s1157_s6, 0 }
  0x5b   : > { %643 = vmatpush3.msra.mxu1 %v298_v5  ;;  %s877_s21 = smov [#allocation7]  }
  0x5c   : > { %645 = vmatmul.mubr.msk.f32.vlgmr.msra.gmra.mrb[0].mxu1 %vm300_vm1, %v374_v6  ;;  %p786_p7 = pnand %p785_p0, %p1165_p5  ;;  %s788_s12 = sshll.u32 %s877_s21, 4  ;;  %s789_s12 = int_to_ptr.vmem [resolvable:$false] %s788_s12 }
  0x5d   : > { %s790_s29 = scalar_lea.vmem %s789_s12, 256  ;;  %p791_p10 = scmp.lt.s32.totalorder %s1099_s24, %s789_s12 }
  0x5e   : > { %p787_p4 = pneg %p786_p7  ;;  %p792_p12 = scmp.lt.s32.totalorder %s790_s29, %s784_s15 }
  0x60   : > { %p793_p1 = por %p792_p12, %p791_p10 }
  0x62   : > { %p794_p2 = pnand %p793_p1, %p787_p4 }
  0xd9   : > { %v452_v7 = vpop.permute.xlu0 %451 }
  0xda   : > { %v454_v8 = vmul.f32 %v452_v7, %v297_v2 }
  0xdc   : > { %v456_v9 = vsel %vm455_vm2, %v454_v8, 0.0 }
  0xdd   : > { %v457_v10 = vrot.slane %v456_v9, 4 }
  0xdf   : > { %v458_v11 = vadd.f32 %v457_v10, %v456_v9 }
  0xe1   : > { %v459_v12 = vrot.slane %v458_v11, 2 }
  0xe3   : > { %v460_v13 = vadd.f32 %v459_v12, %v458_v11 }
  0xe5   : > { %v461_v14 = vrot.slane %v460_v13, 1 }
  0xe7   : > { %v462_v15 = vadd.f32 %v461_v14, %v460_v13 }
 0x12d   : > { %v370_v16 = vpop.f32.mrb[0].mxu0 }
 0x12e   : > { %v463_v17 = vmul.f32 %v462_v15, %v370_v16  ;;  %v641_v18 = vpop.f32.mrb[1].mxu0 }
 0x12f   : > { %v444_v19 = vpop.f32.mrb[0].mxu1 }
 0x130   : > { %v646_v20 = vpop.f32.mrb[1].mxu1  ;;  %v464_v21 = vsel %vm455_vm2, %v463_v17, 0.0 }
 0x131   : > { %v465_v22 = vrot.slane %v464_v21, 4 }
 0x133   : > { %v466_v23 = vadd.f32 %v465_v22, %v464_v21 }
 0x135   : > { %v467_v24 = vrot.slane %v466_v23, 2 }
 0x137   : > { %v468_v25 = vadd.f32 %v467_v24, %v466_v23 }
 0x139   : > { %v469_v26 = vrot.slane %v468_v25, 1 }
 0x13b   : > { %v470_v27 = vadd.f32 %v469_v26, %v468_v25 }
 0x13d   : > { %v471_v28 = vadd.f32 1e-09, %v470_v27 }
 0x13f   : > { %718 = vrcp.f32 %v471_v28 }
 0x149   : > { %v719_v29 = vpop.eup %718 }
 0x14a   : > { %v473_v30 = vmul.f32 %v719_v29, %v463_v17 }
 0x14c   : > { %v474_v31 = vsel %vm455_vm2, %v473_v30, -inf }
 0x14d   : > { %v475_v32 = vrot.slane %v474_v31, 4 }
 0x14f   : > { %v476_v33 = vmax.f32 %v474_v31, %v475_v32 }
 0x151   : > { %v477_v34 = vrot.slane %v476_v33, 2 }
 0x153   : > { %v478_v35 = vmax.f32 %v476_v33, %v477_v34 }
 0x155   : > { %v479_v36 = vrot.slane %v478_v35, 1 }
 0x157   : > { %v480_v37 = vmax.f32 %v478_v35, %v479_v36 }
 0x159   : > { %v481_v38 = vsub.f32 %v473_v30, %v480_v37 }
 0x15b   : > { %v482_v39 = vmul.f32 1.442695, %v481_v38 }
 0x15d   : > { %720 = vpow2.f32 %v482_v39 }
 0x167   : > { %v721_v40 = vpop.eup %720 }
 0x168   : > { %v484_v41 = vsel %vm455_vm2, %v721_v40, 0.0 }
 0x169   : > { %v485_v42 = vrot.slane %v484_v41, 4 }
 0x16b   : > { %v486_v43 = vadd.f32 %v485_v42, %v484_v41 }
 0x16d   : > { %v487_v44 = vrot.slane %v486_v43, 2 }
 0x16f   : > { %v488_v45 = vadd.f32 %v487_v44, %v486_v43 }
 0x171   : > { %v489_v46 = vrot.slane %v488_v45, 1 }
 0x173   : > { %v490_v47 = vadd.f32 %v489_v46, %v488_v45 }
 0x175   : > { %722 = vrcp.f32 %v490_v47 }
 0x17f   : > { %v723_v48 = vpop.eup %722 }
 0x180   : > { %v492_v49 = vmul.f32 %v723_v48, %v721_v40 }
 0x182   : > { %v493_v50 = vmul.f32 %v492_v49, %v444_v19 }
 0x184   : > { %v494_v51 = vadd.f32 %v493_v50, %v298_v5 }
 0x186   : > { %495 = vst.msk [vmem:[%s296_s27] sm:$0xff] %vm455_vm2, %v494_v51 }
 0x187   : > { %797 = shalt.err (!%p794_p2)
}
 0x188   : > { %s798_s16 = scalar_lea.hbm %s1097_s17, 128  ;;  %s802_s30 = scalar_lea.hbm %s1152_s5, 256 }
 0x189   : > { %p799_p9 = scmp.ne.s32.totalorder %s1097_s17, %s798_s16  ;;  %p803_p6 = scmp.lt.u32.totalorder %s1097_s17, %s1152_s5 }
 0x18a   : > { %p804_p13 = scmp.lt.u32.totalorder %s802_s30, %s798_s16  ;;  %p806_p0 = scmp.lt.u32.totalorder %s798_s16, %s1097_s17 }
 0x18b   : > { %p800_p11 = pnand %p799_p9, %p1165_p5 }
 0x18c   : > { %p805_p8 = por %p804_p13, %p803_p6 }
 0x18d   : > { %p801_p3 = pneg %p800_p11 }
 0x18e   : > { %p807_p7 = por %p806_p0, %p805_p8 }
 0x190   : > { %p808_p4 = pnand %p807_p7, %p801_p3 }
 0x192   : > { %811 = shalt.err (!%p808_p4)
}
 0x193   : > { %651 = dma.vmem_to_hbm [thread:$0]  (%p1165_p5), %s1099_s24, 128, %s1097_s17, %s497_s25  }
 0x194 PF: > { %s523_s27 = sand.u32 1, %s850_s18   ;;  %p1166_p10 = scmp.ne.s32.totalorder %s1158_s8, 0 }
 0x195   : > { %p1167_p12 = scmp.ge.s32.totalorder %s870_s23, 2  ;;  %s524_s11 = scalar_lea.sflag [#allocation4], %s523_s27 }
 0x197   : > { %p661_p1 = pnand %p1167_p12, %p1166_p10 }
 0x199   : > { %845 = dma.done.wait (!%p661_p1), %s524_s11, 128  }
 0x19a   : > { %847 = vsyncadd (!%p661_p1), %s524_s11, 4294967168  ;;  %s24_s23 = sadd.s32 1, %s870_s23   ;;  %s1168_s18 = smov %s854_s19 }
 0x19b   : > { %p21_p2 = scmp.ge.s32.totalorder %s24_s23, 4   ;;  %s1169_s19 = smov %s858_s20 }
 0x19c   : > { %s1170_s20 = smov %s964_s7  ;;  %s1171_s21 = smov %s866_s22 }
 0x19d   : > { %s1172_s22 = smov %s1174_s26  ;;  %23 = sbr.rel (!%p21_p2) target bundleno = 8 (0x8), region = 98 }
 0x1a4   :  { %529 = vsyncpa [#allocation3], 1 }
 0x1a5   :  { %531 = vsyncpa [#allocation3 + $0x1], 1 }
 0x1a6   :  { %532 = vsyncpa [#allocation6], 1 }
 0x1a7   :  { %534 = vsyncpa [#allocation6 + $0x1], 1 }
 0x1a8   :  { %535 = vsyncpa [#allocation4], 1 }
 0x1a9   :  { %537 = vsyncpa [#allocation4 + $0x1], 1 }

</bundles_post_ra>
